<compile_context>
chip_gen: v6e
topology: v6e:2x2x1
jax: 0.10.0
libtpu: 0.0.40
codegen_flags: <defaults>
</compile_context>

<pallas_src>
import functools
import math

import jax
import jax.numpy as jnp
from jax import lax
from jax.experimental import pallas as pl
from jax.experimental.pallas import tpu as pltpu

EPS = 1e-5  # PyTorch LayerNorm default eps


def _layer_norm(x, gamma, beta):
    mu = jnp.mean(x, axis=-1, keepdims=True)
    var = jnp.mean((x - mu) ** 2, axis=-1, keepdims=True)
    return (x - mu) * lax.rsqrt(var + EPS) * gamma + beta


def encoder_block_kernel(x_ref,
                         ln1_g_ref, ln1_b_ref,
                         wqkv_ref, bqkv_ref, wo_ref, bo_ref,
                         ln2_g_ref, ln2_b_ref,
                         w1_ref, b1_ref, w2_ref, b2_ref,
                         out_ref,
                         *, num_heads):
    # One grid step == one batch element; the batch dim is squeezed by the
    # BlockSpec, so x_ref is a contiguous (S, E) tile with E on the lane axis.
    x = x_ref[...].astype(jnp.float32)              # (S, E)
    S, E = x.shape
    H = num_heads
    Dh = E // H
    cdt = wqkv_ref.dtype                            # matmul operand dtype (bf16/f32)

    # ---- LayerNorm 1 (f32 statistics) ----
    y = _layer_norm(x, ln1_g_ref[0], ln1_b_ref[0])  # (S, E)

    # ---- Fused QKV projection: single K=E, N=3E MXU matmul ----
    # wqkv_ref is (E, 3E) = [Wq^T | Wk^T | Wv^T]; 1/sqrt(Dh) already folded
    # into the Q slice on the host.
    qkv = jnp.dot(y.astype(cdt), wqkv_ref[...],
                  preferred_element_type=jnp.float32) + bqkv_ref[0]   # (S, 3E)

    # ---- Per-head attention on static lane slices (no (H,S,E) intermediates) ----
    ctx_heads = []
    for h in range(H):                              # H is a small static constant
        lo = h * Dh
        q = qkv[:, lo:lo + Dh].astype(cdt)                      # (S, Dh), pre-scaled
        k = qkv[:, E + lo:E + lo + Dh].astype(cdt)              # (S, Dh)
        v = qkv[:, 2 * E + lo:2 * E + lo + Dh].astype(cdt)      # (S, Dh)

        # scores (S, S): NT matmul, contraction over Dh (no explicit transpose)
        s = lax.dot_general(q, k, (((1,), (1,)), ((), ())),
                            preferred_element_type=jnp.float32)
        s = s - jnp.max(s, axis=-1, keepdims=True)
        p = jnp.exp(s)                                           # f32 (safe on v5e too)
        p = p * pl.reciprocal(jnp.sum(p, axis=-1, keepdims=True), approx=True)

        ctx_heads.append(jnp.dot(p.astype(cdt), v,
                                 preferred_element_type=jnp.float32))  # (S, Dh)

    # Lane-axis head merge -> (S, E), then ONE K=E output projection.
    ctx = jnp.concatenate(ctx_heads, axis=-1)                    # (S, E)
    attn = jnp.dot(ctx.astype(cdt), wo_ref[...],
                   preferred_element_type=jnp.float32) + bo_ref[0]

    x = x + attn                                    # residual 1 (f32)

    # ---- LayerNorm 2 ----
    y = _layer_norm(x, ln2_g_ref[0], ln2_b_ref[0])

    # ---- MLP: Linear -> exact (erf) GELU -> Linear ----
    h1 = jnp.dot(y.astype(cdt), w1_ref[...],
                 preferred_element_type=jnp.float32) + b1_ref[0]          # (S, M)
    h1 = 0.5 * h1 * (1.0 + lax.erf(h1 * (1.0 / math.sqrt(2.0))))
    y2 = jnp.dot(h1.astype(cdt), w2_ref[...],
                 preferred_element_type=jnp.float32) + b2_ref[0]          # (S, E)

    out_ref[...] = (x + y2).astype(out_ref.dtype)   # residual 2


def _prepare_weights(params, num_heads, compute_dtype):
    """One-time host-side re-layout of PyTorch (out, in) weights into
    matmul-ready form.  1/sqrt(Dh) is folded into Wq/bq in f32 before casting
    the matmul operands to compute_dtype.  Biases / LN params stay f32."""
    E = params["wo"].shape[0]
    Dh = E // num_heads
    scale = 1.0 / math.sqrt(Dh)

    wqkv = params["wqkv"].astype(jnp.float32)              # (3E, E): rows [Wq; Wk; Wv]
    bqkv = params["bqkv"].reshape(1, 3 * E).astype(jnp.float32)
    wqkv = wqkv.at[:E].multiply(scale)                     # fold q-scale (f32)
    bqkv = bqkv.at[:, :E].multiply(scale)

    return dict(
        ln1_g=params["ln1_g"], ln1_b=params["ln1_b"],
        wqkv=wqkv.T.astype(compute_dtype),                 # (E, 3E)
        bqkv=bqkv,                                         # (1, 3E) f32
        wo=params["wo"].T.astype(compute_dtype),           # (E, E) = Wo^T
        bo=params["bo"],
        ln2_g=params["ln2_g"], ln2_b=params["ln2_b"],
        w1=params["w1"].T.astype(compute_dtype), b1=params["b1"],   # (E, M)
        w2=params["w2"].T.astype(compute_dtype), b2=params["b2"],   # (M, E)
    )


def _vmem_limit_bytes():
    """Per-generation scoped-VMEM limit: ~75% of physical VMEM
    (v5e/v6e 128 MiB -> ~96 MiB, v7x 64 MiB -> ~48 MiB)."""
    try:
        cap = pltpu.get_tpu_info().vmem_capacity_bytes
    except Exception:
        cap = 128 * 1024 * 1024
    return int(cap * 3 // 4)


def _weight_spec(shape, single_buffer):
    """Full-array weight BlockSpec with a constant index map (no re-DMA across
    grid steps); single-buffered if requested and supported by this JAX."""
    n = len(shape)
    idx = lambda b, _n=n: (0,) * _n
    if single_buffer and hasattr(pl, "Buffered"):
        try:
            return pl.BlockSpec(shape, idx, pipeline_mode=pl.Buffered(1))
        except TypeError:
            pass  # older JAX without pipeline_mode: fall back to default buffering
    return pl.BlockSpec(shape, idx)


def transformer_encoder_block(x_sbe, params, num_heads,
                              compute_dtype=jnp.bfloat16,
                              single_buffer_weights=True):
    """x_sbe: (S, B, E) float32, PyTorch seq-first convention.  Returns (S, B, E)."""
    S, B, E = x_sbe.shape
    assert E % num_heads == 0
    M = params["w1"].shape[0]
    p = _prepare_weights(params, num_heads, compute_dtype)

    # One-time batch-major layout so each grid step gets a contiguous (S, E)
    # tile (for E < 128 the seq-first per-batch slice is sublane-strided and
    # clearly worse; in a full ViT this transpose lives outside the layer stack).
    x_bse = jnp.transpose(x_sbe, (1, 0, 2))                 # (B, S, E)

    ws = functools.partial(_weight_spec, single_buffer=single_buffer_weights)
    in_specs = [
        pl.BlockSpec((None, S, E), lambda b: (b, 0, 0)),    # activations, batch squeezed
        ws((1, E)), ws((1, E)),                             # ln1 gamma/beta
        ws((E, 3 * E)), ws((1, 3 * E)),                     # fused QKV weight/bias
        ws((E, E)), ws((1, E)),                             # out-proj Wo^T, bias
        ws((1, E)), ws((1, E)),                             # ln2 gamma/beta
        ws((E, M)), ws((1, M)),                             # mlp linear1 (pre-transposed)
        ws((M, E)), ws((1, E)),                             # mlp linear2 (pre-transposed)
    ]

    out_bse = pl.pallas_call(
        functools.partial(encoder_block_kernel, num_heads=num_heads),
        out_shape=jax.ShapeDtypeStruct((B, S, E), x_sbe.dtype),
        grid=(B,),
        in_specs=in_specs,
        out_specs=pl.BlockSpec((None, S, E), lambda b: (b, 0, 0)),
        compiler_params=pltpu.CompilerParams(
            dimension_semantics=("parallel",),              # independent batch rows
            vmem_limit_bytes=_vmem_limit_bytes(),
        ),
    )(x_bse,
      p["ln1_g"], p["ln1_b"],
      p["wqkv"], p["bqkv"], p["wo"], p["bo"],
      p["ln2_g"], p["ln2_b"],
      p["w1"], p["b1"], p["w2"], p["b2"])

    return jnp.transpose(out_bse, (1, 0, 2))                # back to (S, B, E)


def reference(x_sbe, params, num_heads):
    """Pure-JAX reference matching PyTorch semantics (dropout=identity)."""
    E = x_sbe.shape[-1]

    def ln(x, g, b):
        mu = jnp.mean(x, -1, keepdims=True)
        var = jnp.mean((x - mu) ** 2, -1, keepdims=True)
        return (x - mu) / jnp.sqrt(var + EPS) * g + b

    x = jnp.transpose(x_sbe, (1, 0, 2))            # (B, S, E)
    B, S, _ = x.shape
    Dh = E // num_heads

    y = ln(x, params["ln1_g"][0], params["ln1_b"][0])
    qkv = jnp.einsum("bse,fe->bsf", y, params["wqkv"]) + params["bqkv"][0]
    q, k, v = jnp.split(qkv, 3, axis=-1)
    q = q.reshape(B, S, num_heads, Dh).transpose(0, 2, 1, 3)
    k = k.reshape(B, S, num_heads, Dh).transpose(0, 2, 1, 3)
    v = v.reshape(B, S, num_heads, Dh).transpose(0, 2, 1, 3)
    s = jnp.einsum("bhqd,bhkd->bhqk", q, k) / math.sqrt(Dh)
    p = jax.nn.softmax(s, axis=-1)
    a = jnp.einsum("bhqk,bhkd->bhqd", p, v).transpose(0, 2, 1, 3).reshape(B, S, E)
    y = jnp.einsum("bse,fe->bsf", a, params["wo"]) + params["bo"][0]
    x = x + y
    y = ln(x, params["ln2_g"][0], params["ln2_b"][0])
    h = jnp.einsum("bse,fe->bsf", y, params["w1"]) + params["b1"][0]
    h = jax.nn.gelu(h, approximate=False)
    y = jnp.einsum("bsf,ef->bse", h, params["w2"]) + params["b2"][0]
    return jnp.transpose(x + y, (1, 0, 2))


def init_params(key, emb_dim, mlp_dim):
    ks = jax.random.split(key, 6)
    sd_e = 1.0 / math.sqrt(emb_dim)
    sd_m = 1.0 / math.sqrt(mlp_dim)
    return {
        "ln1_g": jnp.ones((1, emb_dim), jnp.float32),
        "ln1_b": jnp.zeros((1, emb_dim), jnp.float32),
        "wqkv": jax.random.normal(ks[0], (3 * emb_dim, emb_dim), jnp.float32) * sd_e,
        "bqkv": jax.random.normal(ks[1], (1, 3 * emb_dim), jnp.float32) * 0.02,
        "wo": jax.random.normal(ks[2], (emb_dim, emb_dim), jnp.float32) * sd_e,
        "bo": jnp.zeros((1, emb_dim), jnp.float32),
        "ln2_g": jnp.ones((1, emb_dim), jnp.float32),
        "ln2_b": jnp.zeros((1, emb_dim), jnp.float32),
        "w1": jax.random.normal(ks[3], (mlp_dim, emb_dim), jnp.float32) * sd_e,
        "b1": jax.random.normal(ks[4], (1, mlp_dim), jnp.float32) * 0.02,
        "w2": jax.random.normal(ks[5], (emb_dim, mlp_dim), jnp.float32) * sd_m,
        "b2": jnp.zeros((1, emb_dim), jnp.float32),
    }


if __name__ == "__main__":
    # Small smoke-test shapes: seq=8, batch=2, emb_dim=32, heads=4, mlp_dim=64.
    S, B, E, H, MLP = 8, 2, 32, 4, 64

    key = jax.random.PRNGKey(0)
    kx, kp = jax.random.split(key)
    x = jax.random.normal(kx, (S, B, E), jnp.float32)   # PyTorch MHA seq-first layout
    params = init_params(kp, E, MLP)
    ref = reference(x, params, num_heads=H)

    # f32 matmul-operand path: validates kernel structure tightly
    # (tolerance covers the EUP approximate-reciprocal softmax normalization).
    out_f32 = transformer_encoder_block(x, params, num_heads=H,
                                        compute_dtype=jnp.float32)
    out_f32 = jax.block_until_ready(out_f32)
    assert out_f32.shape == (S, B, E)
    assert jnp.allclose(out_f32, ref, atol=5e-3, rtol=5e-3), (
        "f32 kernel/reference mismatch, max abs err=%f"
        % float(jnp.max(jnp.abs(out_f32 - ref))))

    # default bf16 MXU-operand path (f32 accumulation): looser tolerance.
    out_bf16 = transformer_encoder_block(x, params, num_heads=H)
    out_bf16 = jax.block_until_ready(out_bf16)
    assert out_bf16.shape == (S, B, E)
    assert jnp.allclose(out_bf16, ref, atol=1.5e-1, rtol=1e-1), (
        "bf16 kernel/reference mismatch, max abs err=%f"
        % float(jnp.max(jnp.abs(out_bf16 - ref))))

    print("KERNEL_OK")
</pallas_src>

<mosaic_0001>
module attributes {stable_mosaic.version = 11 : i64} {
  func.func @encoder_block_kernel(%arg0: i32, %arg1: memref<1x8x32xf32, #tpu.memory_space<vmem>>, %arg2: memref<1x32xf32, #tpu.memory_space<vmem>>, %arg3: memref<1x32xf32, #tpu.memory_space<vmem>>, %arg4: memref<32x96xf32, #tpu.memory_space<vmem>>, %arg5: memref<1x96xf32, #tpu.memory_space<vmem>>, %arg6: memref<32x32xf32, #tpu.memory_space<vmem>>, %arg7: memref<1x32xf32, #tpu.memory_space<vmem>>, %arg8: memref<1x32xf32, #tpu.memory_space<vmem>>, %arg9: memref<1x32xf32, #tpu.memory_space<vmem>>, %arg10: memref<32x64xf32, #tpu.memory_space<vmem>>, %arg11: memref<1x64xf32, #tpu.memory_space<vmem>>, %arg12: memref<64x32xf32, #tpu.memory_space<vmem>>, %arg13: memref<1x32xf32, #tpu.memory_space<vmem>>, %arg14: memref<1x8x32xf32, #tpu.memory_space<vmem>>) attributes {dimension_semantics = [#tpu.dimension_semantics<parallel>], iteration_bounds = array<i64: 2>, scalar_prefetch = 0 : i64, scratch_operands = 0 : i64, tpu.core_type = #tpu.core_type<tc>, window_params = [{transform_indices = @transform_0, window_bounds = array<i64: 1, 8, 32>}, {pipeline_mode = #tpu.pipeline_mode<synchronous>, transform_indices = @transform_1, window_bounds = array<i64: 1, 32>}, {pipeline_mode = #tpu.pipeline_mode<synchronous>, transform_indices = @transform_2, window_bounds = array<i64: 1, 32>}, {pipeline_mode = #tpu.pipeline_mode<synchronous>, transform_indices = @transform_3, window_bounds = array<i64: 32, 96>}, {pipeline_mode = #tpu.pipeline_mode<synchronous>, transform_indices = @transform_4, window_bounds = array<i64: 1, 96>}, {pipeline_mode = #tpu.pipeline_mode<synchronous>, transform_indices = @transform_5, window_bounds = array<i64: 32, 32>}, {pipeline_mode = #tpu.pipeline_mode<synchronous>, transform_indices = @transform_6, window_bounds = array<i64: 1, 32>}, {pipeline_mode = #tpu.pipeline_mode<synchronous>, transform_indices = @transform_7, window_bounds = array<i64: 1, 32>}, {pipeline_mode = #tpu.pipeline_mode<synchronous>, transform_indices = @transform_8, window_bounds = array<i64: 1, 32>}, {pipeline_mode = #tpu.pipeline_mode<synchronous>, transform_indices = @transform_9, window_bounds = array<i64: 32, 64>}, {pipeline_mode = #tpu.pipeline_mode<synchronous>, transform_indices = @transform_10, window_bounds = array<i64: 1, 64>}, {pipeline_mode = #tpu.pipeline_mode<synchronous>, transform_indices = @transform_11, window_bounds = array<i64: 64, 32>}, {pipeline_mode = #tpu.pipeline_mode<synchronous>, transform_indices = @transform_12, window_bounds = array<i64: 1, 32>}, {transform_indices = @transform_13, window_bounds = array<i64: 1, 8, 32>}]} {
    %c0 = arith.constant 0 : index
    %c0_0 = arith.constant 0 : index
    %c0_1 = arith.constant 0 : index
    %0 = vector.load %arg1[%c0, %c0_0, %c0_1] : memref<1x8x32xf32, #tpu.memory_space<vmem>>, vector<1x8x32xf32>
    %1 = vector.shape_cast %0 : vector<1x8x32xf32> to vector<8x32xf32>
    %c0_2 = arith.constant 0 : index
    %c0_3 = arith.constant 0 : index
    %2 = vector.load %arg2[%c0_2, %c0_3] : memref<1x32xf32, #tpu.memory_space<vmem>>, vector<1x32xf32>
    %3 = vector.shape_cast %2 : vector<1x32xf32> to vector<32xf32>
    %c0_4 = arith.constant 0 : index
    %c0_5 = arith.constant 0 : index
    %4 = vector.load %arg3[%c0_4, %c0_5] : memref<1x32xf32, #tpu.memory_space<vmem>>, vector<1x32xf32>
    %5 = vector.shape_cast %4 : vector<1x32xf32> to vector<32xf32>
    %cst = arith.constant dense<0.000000e+00> : vector<8xf32>
    %6 = vector.multi_reduction <add>, %1, %cst [1] : vector<8x32xf32> to vector<8xf32>
    %7 = vector.shape_cast %6 : vector<8xf32> to vector<8x1xf32>
    %cst_6 = arith.constant 3.200000e+01 : f32
    %8 = vector.broadcast %cst_6 : f32 to vector<8x1xf32>
    %9 = arith.divf %7, %8 : vector<8x1xf32>
    %10 = vector.broadcast %9 : vector<8x1xf32> to vector<8x32xf32>
    %11 = arith.subf %1, %10 : vector<8x32xf32>
    %12 = arith.mulf %11, %11 : vector<8x32xf32>
    %cst_7 = arith.constant dense<0.000000e+00> : vector<8xf32>
    %13 = vector.multi_reduction <add>, %12, %cst_7 [1] : vector<8x32xf32> to vector<8xf32>
    %14 = vector.shape_cast %13 : vector<8xf32> to vector<8x1xf32>
    %cst_8 = arith.constant 3.200000e+01 : f32
    %15 = vector.broadcast %cst_8 : f32 to vector<8x1xf32>
    %16 = arith.divf %14, %15 : vector<8x1xf32>
    %17 = vector.broadcast %9 : vector<8x1xf32> to vector<8x32xf32>
    %18 = arith.subf %1, %17 : vector<8x32xf32>
    %cst_9 = arith.constant 9.99999974E-6 : f32
    %19 = vector.broadcast %cst_9 : f32 to vector<8x1xf32>
    %20 = arith.addf %16, %19 : vector<8x1xf32>
    %21 = math.rsqrt %20 : vector<8x1xf32>
    %22 = vector.broadcast %21 : vector<8x1xf32> to vector<8x32xf32>
    %23 = arith.mulf %18, %22 : vector<8x32xf32>
    %24 = vector.shape_cast %3 : vector<32xf32> to vector<1x32xf32>
    %25 = vector.broadcast %24 : vector<1x32xf32> to vector<8x32xf32>
    %26 = arith.mulf %23, %25 : vector<8x32xf32>
    %27 = vector.shape_cast %5 : vector<32xf32> to vector<1x32xf32>
    %28 = vector.broadcast %27 : vector<1x32xf32> to vector<8x32xf32>
    %29 = arith.addf %26, %28 : vector<8x32xf32>
    %c0_10 = arith.constant 0 : index
    %c0_11 = arith.constant 0 : index
    %30 = vector.load %arg4[%c0_10, %c0_11] : memref<32x96xf32, #tpu.memory_space<vmem>>, vector<32x96xf32>
    %cst_12 = arith.constant dense<0.000000e+00> : vector<8x96xf32>
    %31 = tpu.matmul %29, %30, %cst_12 {dimension_numbers = #tpu.dot_dimension_numbers<[1], [0], [0], [1], [0, 0, 1, 1], [], []>} : vector<8x32xf32>, vector<32x96xf32>, vector<8x96xf32> -> vector<8x96xf32>
    %c0_13 = arith.constant 0 : index
    %c0_14 = arith.constant 0 : index
    %32 = vector.load %arg5[%c0_13, %c0_14] : memref<1x96xf32, #tpu.memory_space<vmem>>, vector<1x96xf32>
    %33 = vector.shape_cast %32 : vector<1x96xf32> to vector<96xf32>
    %34 = vector.shape_cast %33 : vector<96xf32> to vector<1x96xf32>
    %35 = vector.broadcast %34 : vector<1x96xf32> to vector<8x96xf32>
    %36 = arith.addf %31, %35 : vector<8x96xf32>
    %37 = vector.extract_strided_slice %36 {offsets = [0, 0], sizes = [8, 8], strides = [1, 1]} : vector<8x96xf32> to vector<8x8xf32>
    %38 = vector.extract_strided_slice %36 {offsets = [0, 32], sizes = [8, 8], strides = [1, 1]} : vector<8x96xf32> to vector<8x8xf32>
    %39 = vector.extract_strided_slice %36 {offsets = [0, 64], sizes = [8, 8], strides = [1, 1]} : vector<8x96xf32> to vector<8x8xf32>
    %cst_15 = arith.constant dense<0.000000e+00> : vector<8x8xf32>
    %40 = tpu.matmul %37, %38, %cst_15 {dimension_numbers = #tpu.dot_dimension_numbers<[1], [1], [0], [0], [0, 0, 1, 0], [], []>} : vector<8x8xf32>, vector<8x8xf32>, vector<8x8xf32> -> vector<8x8xf32>
    %cst_16 = arith.constant dense<0xFF800000> : vector<8xf32>
    %41 = vector.multi_reduction <maximumf>, %40, %cst_16 [1] : vector<8x8xf32> to vector<8xf32>
    %42 = vector.shape_cast %41 : vector<8xf32> to vector<8x1xf32>
    %43 = vector.broadcast %42 : vector<8x1xf32> to vector<8x8xf32>
    %44 = arith.subf %40, %43 : vector<8x8xf32>
    %45 = math.exp %44 : vector<8x8xf32>
    %cst_17 = arith.constant dense<0.000000e+00> : vector<8xf32>
    %46 = vector.multi_reduction <add>, %45, %cst_17 [1] : vector<8x8xf32> to vector<8xf32>
    %47 = vector.shape_cast %46 : vector<8xf32> to vector<8x1xf32>
    %48 = tpu.reciprocal %47 {approx = true} : vector<8x1xf32> -> vector<8x1xf32>
    %49 = vector.broadcast %48 : vector<8x1xf32> to vector<8x8xf32>
    %50 = arith.mulf %45, %49 : vector<8x8xf32>
    %cst_18 = arith.constant dense<0.000000e+00> : vector<8x8xf32>
    %51 = tpu.matmul %50, %39, %cst_18 {dimension_numbers = #tpu.dot_dimension_numbers<[1], [0], [0], [1], [0, 0, 1, 1], [], []>} : vector<8x8xf32>, vector<8x8xf32>, vector<8x8xf32> -> vector<8x8xf32>
    %52 = vector.extract_strided_slice %36 {offsets = [0, 8], sizes = [8, 8], strides = [1, 1]} : vector<8x96xf32> to vector<8x8xf32>
    %53 = vector.extract_strided_slice %36 {offsets = [0, 40], sizes = [8, 8], strides = [1, 1]} : vector<8x96xf32> to vector<8x8xf32>
    %54 = vector.extract_strided_slice %36 {offsets = [0, 72], sizes = [8, 8], strides = [1, 1]} : vector<8x96xf32> to vector<8x8xf32>
    %cst_19 = arith.constant dense<0.000000e+00> : vector<8x8xf32>
    %55 = tpu.matmul %52, %53, %cst_19 {dimension_numbers = #tpu.dot_dimension_numbers<[1], [1], [0], [0], [0, 0, 1, 0], [], []>} : vector<8x8xf32>, vector<8x8xf32>, vector<8x8xf32> -> vector<8x8xf32>
    %cst_20 = arith.constant dense<0xFF800000> : vector<8xf32>
    %56 = vector.multi_reduction <maximumf>, %55, %cst_20 [1] : vector<8x8xf32> to vector<8xf32>
    %57 = vector.shape_cast %56 : vector<8xf32> to vector<8x1xf32>
    %58 = vector.broadcast %57 : vector<8x1xf32> to vector<8x8xf32>
    %59 = arith.subf %55, %58 : vector<8x8xf32>
    %60 = math.exp %59 : vector<8x8xf32>
    %cst_21 = arith.constant dense<0.000000e+00> : vector<8xf32>
    %61 = vector.multi_reduction <add>, %60, %cst_21 [1] : vector<8x8xf32> to vector<8xf32>
    %62 = vector.shape_cast %61 : vector<8xf32> to vector<8x1xf32>
    %63 = tpu.reciprocal %62 {approx = true} : vector<8x1xf32> -> vector<8x1xf32>
    %64 = vector.broadcast %63 : vector<8x1xf32> to vector<8x8xf32>
    %65 = arith.mulf %60, %64 : vector<8x8xf32>
    %cst_22 = arith.constant dense<0.000000e+00> : vector<8x8xf32>
    %66 = tpu.matmul %65, %54, %cst_22 {dimension_numbers = #tpu.dot_dimension_numbers<[1], [0], [0], [1], [0, 0, 1, 1], [], []>} : vector<8x8xf32>, vector<8x8xf32>, vector<8x8xf32> -> vector<8x8xf32>
    %67 = vector.extract_strided_slice %36 {offsets = [0, 16], sizes = [8, 8], strides = [1, 1]} : vector<8x96xf32> to vector<8x8xf32>
    %68 = vector.extract_strided_slice %36 {offsets = [0, 48], sizes = [8, 8], strides = [1, 1]} : vector<8x96xf32> to vector<8x8xf32>
    %69 = vector.extract_strided_slice %36 {offsets = [0, 80], sizes = [8, 8], strides = [1, 1]} : vector<8x96xf32> to vector<8x8xf32>
    %cst_23 = arith.constant dense<0.000000e+00> : vector<8x8xf32>
    %70 = tpu.matmul %67, %68, %cst_23 {dimension_numbers = #tpu.dot_dimension_numbers<[1], [1], [0], [0], [0, 0, 1, 0], [], []>} : vector<8x8xf32>, vector<8x8xf32>, vector<8x8xf32> -> vector<8x8xf32>
    %cst_24 = arith.constant dense<0xFF800000> : vector<8xf32>
    %71 = vector.multi_reduction <maximumf>, %70, %cst_24 [1] : vector<8x8xf32> to vector<8xf32>
    %72 = vector.shape_cast %71 : vector<8xf32> to vector<8x1xf32>
    %73 = vector.broadcast %72 : vector<8x1xf32> to vector<8x8xf32>
    %74 = arith.subf %70, %73 : vector<8x8xf32>
    %75 = math.exp %74 : vector<8x8xf32>
    %cst_25 = arith.constant dense<0.000000e+00> : vector<8xf32>
    %76 = vector.multi_reduction <add>, %75, %cst_25 [1] : vector<8x8xf32> to vector<8xf32>
    %77 = vector.shape_cast %76 : vector<8xf32> to vector<8x1xf32>
    %78 = tpu.reciprocal %77 {approx = true} : vector<8x1xf32> -> vector<8x1xf32>
    %79 = vector.broadcast %78 : vector<8x1xf32> to vector<8x8xf32>
    %80 = arith.mulf %75, %79 : vector<8x8xf32>
    %cst_26 = arith.constant dense<0.000000e+00> : vector<8x8xf32>
    %81 = tpu.matmul %80, %69, %cst_26 {dimension_numbers = #tpu.dot_dimension_numbers<[1], [0], [0], [1], [0, 0, 1, 1], [], []>} : vector<8x8xf32>, vector<8x8xf32>, vector<8x8xf32> -> vector<8x8xf32>
    %82 = vector.extract_strided_slice %36 {offsets = [0, 24], sizes = [8, 8], strides = [1, 1]} : vector<8x96xf32> to vector<8x8xf32>
    %83 = vector.extract_strided_slice %36 {offsets = [0, 56], sizes = [8, 8], strides = [1, 1]} : vector<8x96xf32> to vector<8x8xf32>
    %84 = vector.extract_strided_slice %36 {offsets = [0, 88], sizes = [8, 8], strides = [1, 1]} : vector<8x96xf32> to vector<8x8xf32>
    %cst_27 = arith.constant dense<0.000000e+00> : vector<8x8xf32>
    %85 = tpu.matmul %82, %83, %cst_27 {dimension_numbers = #tpu.dot_dimension_numbers<[1], [1], [0], [0], [0, 0, 1, 0], [], []>} : vector<8x8xf32>, vector<8x8xf32>, vector<8x8xf32> -> vector<8x8xf32>
    %cst_28 = arith.constant dense<0xFF800000> : vector<8xf32>
    %86 = vector.multi_reduction <maximumf>, %85, %cst_28 [1] : vector<8x8xf32> to vector<8xf32>
    %87 = vector.shape_cast %86 : vector<8xf32> to vector<8x1xf32>
    %88 = vector.broadcast %87 : vector<8x1xf32> to vector<8x8xf32>
    %89 = arith.subf %85, %88 : vector<8x8xf32>
    %90 = math.exp %89 : vector<8x8xf32>
    %cst_29 = arith.constant dense<0.000000e+00> : vector<8xf32>
    %91 = vector.multi_reduction <add>, %90, %cst_29 [1] : vector<8x8xf32> to vector<8xf32>
    %92 = vector.shape_cast %91 : vector<8xf32> to vector<8x1xf32>
    %93 = tpu.reciprocal %92 {approx = true} : vector<8x1xf32> -> vector<8x1xf32>
    %94 = vector.broadcast %93 : vector<8x1xf32> to vector<8x8xf32>
    %95 = arith.mulf %90, %94 : vector<8x8xf32>
    %cst_30 = arith.constant dense<0.000000e+00> : vector<8x8xf32>
    %96 = tpu.matmul %95, %84, %cst_30 {dimension_numbers = #tpu.dot_dimension_numbers<[1], [0], [0], [1], [0, 0, 1, 1], [], []>} : vector<8x8xf32>, vector<8x8xf32>, vector<8x8xf32> -> vector<8x8xf32>
    %97 = tpu.concatenate %51, %66, %81, %96 in 1 : vector<8x8xf32>, vector<8x8xf32>, vector<8x8xf32>, vector<8x8xf32> -> vector<8x32xf32>
    %c0_31 = arith.constant 0 : index
    %c0_32 = arith.constant 0 : index
    %98 = vector.load %arg6[%c0_31, %c0_32] : memref<32x32xf32, #tpu.memory_space<vmem>>, vector<32x32xf32>
    %cst_33 = arith.constant dense<0.000000e+00> : vector<8x32xf32>
    %99 = tpu.matmul %97, %98, %cst_33 {dimension_numbers = #tpu.dot_dimension_numbers<[1], [0], [0], [1], [0, 0, 1, 1], [], []>} : vector<8x32xf32>, vector<32x32xf32>, vector<8x32xf32> -> vector<8x32xf32>
    %c0_34 = arith.constant 0 : index
    %c0_35 = arith.constant 0 : index
    %100 = vector.load %arg7[%c0_34, %c0_35] : memref<1x32xf32, #tpu.memory_space<vmem>>, vector<1x32xf32>
    %101 = vector.shape_cast %100 : vector<1x32xf32> to vector<32xf32>
    %102 = vector.shape_cast %101 : vector<32xf32> to vector<1x32xf32>
    %103 = vector.broadcast %102 : vector<1x32xf32> to vector<8x32xf32>
    %104 = arith.addf %99, %103 : vector<8x32xf32>
    %105 = arith.addf %1, %104 : vector<8x32xf32>
    %c0_36 = arith.constant 0 : index
    %c0_37 = arith.constant 0 : index
    %106 = vector.load %arg8[%c0_36, %c0_37] : memref<1x32xf32, #tpu.memory_space<vmem>>, vector<1x32xf32>
    %107 = vector.shape_cast %106 : vector<1x32xf32> to vector<32xf32>
    %c0_38 = arith.constant 0 : index
    %c0_39 = arith.constant 0 : index
    %108 = vector.load %arg9[%c0_38, %c0_39] : memref<1x32xf32, #tpu.memory_space<vmem>>, vector<1x32xf32>
    %109 = vector.shape_cast %108 : vector<1x32xf32> to vector<32xf32>
    %cst_40 = arith.constant dense<0.000000e+00> : vector<8xf32>
    %110 = vector.multi_reduction <add>, %105, %cst_40 [1] : vector<8x32xf32> to vector<8xf32>
    %111 = vector.shape_cast %110 : vector<8xf32> to vector<8x1xf32>
    %cst_41 = arith.constant 3.200000e+01 : f32
    %112 = vector.broadcast %cst_41 : f32 to vector<8x1xf32>
    %113 = arith.divf %111, %112 : vector<8x1xf32>
    %114 = vector.broadcast %113 : vector<8x1xf32> to vector<8x32xf32>
    %115 = arith.subf %105, %114 : vector<8x32xf32>
    %116 = arith.mulf %115, %115 : vector<8x32xf32>
    %cst_42 = arith.constant dense<0.000000e+00> : vector<8xf32>
    %117 = vector.multi_reduction <add>, %116, %cst_42 [1] : vector<8x32xf32> to vector<8xf32>
    %118 = vector.shape_cast %117 : vector<8xf32> to vector<8x1xf32>
    %cst_43 = arith.constant 3.200000e+01 : f32
    %119 = vector.broadcast %cst_43 : f32 to vector<8x1xf32>
    %120 = arith.divf %118, %119 : vector<8x1xf32>
    %121 = vector.broadcast %113 : vector<8x1xf32> to vector<8x32xf32>
    %122 = arith.subf %105, %121 : vector<8x32xf32>
    %cst_44 = arith.constant 9.99999974E-6 : f32
    %123 = vector.broadcast %cst_44 : f32 to vector<8x1xf32>
    %124 = arith.addf %120, %123 : vector<8x1xf32>
    %125 = math.rsqrt %124 : vector<8x1xf32>
    %126 = vector.broadcast %125 : vector<8x1xf32> to vector<8x32xf32>
    %127 = arith.mulf %122, %126 : vector<8x32xf32>
    %128 = vector.shape_cast %107 : vector<32xf32> to vector<1x32xf32>
    %129 = vector.broadcast %128 : vector<1x32xf32> to vector<8x32xf32>
    %130 = arith.mulf %127, %129 : vector<8x32xf32>
    %131 = vector.shape_cast %109 : vector<32xf32> to vector<1x32xf32>
    %132 = vector.broadcast %131 : vector<1x32xf32> to vector<8x32xf32>
    %133 = arith.addf %130, %132 : vector<8x32xf32>
    %c0_45 = arith.constant 0 : index
    %c0_46 = arith.constant 0 : index
    %134 = vector.load %arg10[%c0_45, %c0_46] : memref<32x64xf32, #tpu.memory_space<vmem>>, vector<32x64xf32>
    %cst_47 = arith.constant dense<0.000000e+00> : vector<8x64xf32>
    %135 = tpu.matmul %133, %134, %cst_47 {dimension_numbers = #tpu.dot_dimension_numbers<[1], [0], [0], [1], [0, 0, 1, 1], [], []>} : vector<8x32xf32>, vector<32x64xf32>, vector<8x64xf32> -> vector<8x64xf32>
    %c0_48 = arith.constant 0 : index
    %c0_49 = arith.constant 0 : index
    %136 = vector.load %arg11[%c0_48, %c0_49] : memref<1x64xf32, #tpu.memory_space<vmem>>, vector<1x64xf32>
    %137 = vector.shape_cast %136 : vector<1x64xf32> to vector<64xf32>
    %138 = vector.shape_cast %137 : vector<64xf32> to vector<1x64xf32>
    %139 = vector.broadcast %138 : vector<1x64xf32> to vector<8x64xf32>
    %140 = arith.addf %135, %139 : vector<8x64xf32>
    %cst_50 = arith.constant 5.000000e-01 : f32
    %141 = vector.broadcast %cst_50 : f32 to vector<8x64xf32>
    %142 = arith.mulf %141, %140 : vector<8x64xf32>
    %cst_51 = arith.constant 0.707106769 : f32
    %143 = vector.broadcast %cst_51 : f32 to vector<8x64xf32>
    %144 = arith.mulf %140, %143 : vector<8x64xf32>
    %145 = math.erf %144 : vector<8x64xf32>
    %cst_52 = arith.constant 1.000000e+00 : f32
    %146 = vector.broadcast %cst_52 : f32 to vector<8x64xf32>
    %147 = arith.addf %146, %145 : vector<8x64xf32>
    %148 = arith.mulf %142, %147 : vector<8x64xf32>
    %c0_53 = arith.constant 0 : index
    %c0_54 = arith.constant 0 : index
    %149 = vector.load %arg12[%c0_53, %c0_54] : memref<64x32xf32, #tpu.memory_space<vmem>>, vector<64x32xf32>
    %cst_55 = arith.constant dense<0.000000e+00> : vector<8x32xf32>
    %150 = tpu.matmul %148, %149, %cst_55 {dimension_numbers = #tpu.dot_dimension_numbers<[1], [0], [0], [1], [0, 0, 1, 1], [], []>} : vector<8x64xf32>, vector<64x32xf32>, vector<8x32xf32> -> vector<8x32xf32>
    %c0_56 = arith.constant 0 : index
    %c0_57 = arith.constant 0 : index
    %151 = vector.load %arg13[%c0_56, %c0_57] : memref<1x32xf32, #tpu.memory_space<vmem>>, vector<1x32xf32>
    %152 = vector.shape_cast %151 : vector<1x32xf32> to vector<32xf32>
    %153 = vector.shape_cast %152 : vector<32xf32> to vector<1x32xf32>
    %154 = vector.broadcast %153 : vector<1x32xf32> to vector<8x32xf32>
    %155 = arith.addf %150, %154 : vector<8x32xf32>
    %156 = arith.addf %105, %155 : vector<8x32xf32>
    %c0_58 = arith.constant 0 : index
    %c0_59 = arith.constant 0 : index
    %c0_60 = arith.constant 0 : index
    %157 = vector.load %arg14[%c0_58, %c0_59, %c0_60] : memref<1x8x32xf32, #tpu.memory_space<vmem>>, vector<1x8x32xf32>
    %158 = vector.shape_cast %157 : vector<1x8x32xf32> to vector<8x32xf32>
    %159 = vector.shape_cast %156 : vector<8x32xf32> to vector<1x8x32xf32>
    tpu.vector_store %arg14[%c0_58, %c0_59, %c0_60], %159 {strides = array<i32>} : memref<1x8x32xf32, #tpu.memory_space<vmem>>, vector<1x8x32xf32>,
    return
  }
  func.func @transform_0(%arg0: i32) -> (i32, i32, i32) {
    %c0_i32 = arith.constant 0 : i32
    %c0_i32_0 = arith.constant 0 : i32
    %c0_i32_1 = arith.constant 0 : i32
    return %arg0, %c0_i32, %c0_i32_0 : i32, i32, i32
  }
  func.func @transform_1(%arg0: i32) -> (i32, i32) {
    %c0_i32 = arith.constant 0 : i32
    %c0_i32_0 = arith.constant 0 : i32
    %c0_i32_1 = arith.constant 0 : i32
    return %c0_i32, %c0_i32_0 : i32, i32
  }
  func.func @transform_2(%arg0: i32) -> (i32, i32) {
    %c0_i32 = arith.constant 0 : i32
    %c0_i32_0 = arith.constant 0 : i32
    %c0_i32_1 = arith.constant 0 : i32
    return %c0_i32, %c0_i32_0 : i32, i32
  }
  func.func @transform_3(%arg0: i32) -> (i32, i32) {
    %c0_i32 = arith.constant 0 : i32
    %c0_i32_0 = arith.constant 0 : i32
    %c0_i32_1 = arith.constant 0 : i32
    return %c0_i32, %c0_i32_0 : i32, i32
  }
  func.func @transform_4(%arg0: i32) -> (i32, i32) {
    %c0_i32 = arith.constant 0 : i32
    %c0_i32_0 = arith.constant 0 : i32
    %c0_i32_1 = arith.constant 0 : i32
    return %c0_i32, %c0_i32_0 : i32, i32
  }
  func.func @transform_5(%arg0: i32) -> (i32, i32) {
    %c0_i32 = arith.constant 0 : i32
    %c0_i32_0 = arith.constant 0 : i32
    %c0_i32_1 = arith.constant 0 : i32
    return %c0_i32, %c0_i32_0 : i32, i32
  }
  func.func @transform_6(%arg0: i32) -> (i32, i32) {
    %c0_i32 = arith.constant 0 : i32
    %c0_i32_0 = arith.constant 0 : i32
    %c0_i32_1 = arith.constant 0 : i32
    return %c0_i32, %c0_i32_0 : i32, i32
  }
  func.func @transform_7(%arg0: i32) -> (i32, i32) {
    %c0_i32 = arith.constant 0 : i32
    %c0_i32_0 = arith.constant 0 : i32
    %c0_i32_1 = arith.constant 0 : i32
    return %c0_i32, %c0_i32_0 : i32, i32
  }
  func.func @transform_8(%arg0: i32) -> (i32, i32) {
    %c0_i32 = arith.constant 0 : i32
    %c0_i32_0 = arith.constant 0 : i32
    %c0_i32_1 = arith.constant 0 : i32
    return %c0_i32, %c0_i32_0 : i32, i32
  }
  func.func @transform_9(%arg0: i32) -> (i32, i32) {
    %c0_i32 = arith.constant 0 : i32
    %c0_i32_0 = arith.constant 0 : i32
    %c0_i32_1 = arith.constant 0 : i32
    return %c0_i32, %c0_i32_0 : i32, i32
  }
  func.func @transform_10(%arg0: i32) -> (i32, i32) {
    %c0_i32 = arith.constant 0 : i32
    %c0_i32_0 = arith.constant 0 : i32
    %c0_i32_1 = arith.constant 0 : i32
    return %c0_i32, %c0_i32_0 : i32, i32
  }
  func.func @transform_11(%arg0: i32) -> (i32, i32) {
    %c0_i32 = arith.constant 0 : i32
    %c0_i32_0 = arith.constant 0 : i32
    %c0_i32_1 = arith.constant 0 : i32
    return %c0_i32, %c0_i32_0 : i32, i32
  }
  func.func @transform_12(%arg0: i32) -> (i32, i32) {
    %c0_i32 = arith.constant 0 : i32
    %c0_i32_0 = arith.constant 0 : i32
    %c0_i32_1 = arith.constant 0 : i32
    return %c0_i32, %c0_i32_0 : i32, i32
  }
  func.func @transform_13(%arg0: i32) -> (i32, i32, i32) {
    %c0_i32 = arith.constant 0 : i32
    %c0_i32_0 = arith.constant 0 : i32
    %c0_i32_1 = arith.constant 0 : i32
    return %arg0, %c0_i32, %c0_i32_0 : i32, i32, i32
  }
}

</mosaic_0001>

<bundles_post_ra>
// kernel: tpu_custom_call.1
= control target key start
LH: loop header
LB: loop body
LE: loop exit
PB: predicated region body
PF: predicated region fallthrough
CT: control target
= control target key end

     0   :  { %s2395_s0 = inlined_call_operand.hbm [shape: f32[2,8,32], index: 0, kind: input, shape index: {}]   ;;  %s2396_s1 = inlined_call_operand.vmem [shape: f32[1,32], index: 1, kind: input, shape index: {}]   ;;  %s2397_s2 = inlined_call_operand.vmem [shape: f32[1,32], index: 2, kind: input, shape index: {}]   ;;  %s2398_s3 = inlined_call_operand.vmem [shape: f32[32,96], index: 3, kind: input, shape index: {}]   ;;  %s2399_s4 = inlined_call_operand.vmem [shape: f32[1,96], index: 4, kind: input, shape index: {}]   ;;  %s2400_s5 = inlined_call_operand.vmem [shape: f32[32,32], index: 5, kind: input, shape index: {}]   ;;  %s2401_s6 = inlined_call_operand.vmem [shape: f32[1,32], index: 6, kind: input, shape index: {}]   ;;  %s2402_s7 = inlined_call_operand.vmem [shape: f32[1,32], index: 7, kind: input, shape index: {}]   ;;  %s2403_s8 = inlined_call_operand.vmem [shape: f32[1,32], index: 8, kind: input, shape index: {}]   ;;  %s2404_s9 = inlined_call_operand.vmem [shape: f32[32,64], index: 9, kind: input, shape index: {}]   ;;  %s2405_s10 = inlined_call_operand.vmem [shape: f32[1,64], index: 10, kind: input, shape index: {}]   ;;  %s2406_s11 = inlined_call_operand.vmem [shape: f32[64,32], index: 11, kind: input, shape index: {}]   ;;  %s2407_s12 = inlined_call_operand.vmem [shape: f32[1,32], index: 12, kind: input, shape index: {}]   ;;  %s2408_s13 = inlined_call_operand.hbm [shape: f32[2,8,32], index: 13, kind: output, shape index: {}]  }
   0x1   :  { %2417 = sst [smem:[#allocation13_spill]] %s2408_s13 }
   0x2   :  { %18 = vsyncpa [#allocation3], 0 }
   0x3   :  { %20 = vsyncpa [#allocation3 + $0x1], 0 }
   0x4   :  { %21 = vsyncpa [#allocation4], 0 }
   0x5   :  { %23 = vsyncpa [#allocation4 + $0x1], 0  ;;  %s2061_s25 = smov 0   ;;  %s2063_s26 = smov 0  }
   0x6   :  { %s2065_s27 = smov 0   ;;  %s2067_s28 = smov 0  }
   0x7 LB: > { %2418 = sst [smem:[#allocation8_spill]] %s1959_s25  ;;  %s2082_s29 = sadd.s32 4294967295, %s1971_s28   ;;  %s1971_s28 = sphi %s2067_s28, %s2437_s28   ;;  %s1967_s27 = sphi %s2065_s27, %s2439_s27   ;;  %s1963_s26 = sphi %s2063_s26, %s2441_s26   ;;  %s1959_s25 = sphi %s2061_s25, %s2440_s25  }
   0x8   : > { %2419 = sst [smem:[#allocation9_spill]] %s1967_s27  ;;  %s1627_s30 = sadd.s32 4294967294, %s1971_s28  }
   0x9   : > { %s2086_s14 = sadd.s32 1, %s1971_s28   ;;  %s36_s15 = sadd.s32 1, %s1967_s27 }
   0xa   : > { %2420 = sst [smem:[#allocation10_spill]] %s2086_s14  ;;  %s33_s16 = ssub.s32 %s1971_s28, %s2086_s14 }
   0xb   : > { %p43_p0 = scmp.ne.s32.totalorder %s1967_s27, %s1963_s26  ;;  %p34_p1 = scmp.eq.s32.totalorder %s33_s16, 0 }
   0xc   : > { %p44_p2 = scmp.eq.s32.totalorder %s1971_s28, 0  ;;  %p49_p3 = scmp.ne.s32.totalorder %s1963_s26, %s1959_s25 }
   0xd   : > { %p50_p4 = scmp.eq.s32.totalorder %s2082_s29, 0  ;;  %p325_p7 = scmp.eq.s32.totalorder %s2082_s29, 1 }
   0xe   : > { %s2098_s17 = scalar_select %p34_p1, %s1967_s27, %s36_s15  }
   0xf   : > { %p2100_p5 = por %p44_p2, %p43_p0  ;;  %p2104_p6 = por %p50_p4, %p49_p3 }
  0x10   : > { %2421 = sst [smem:[#allocation11_spill]] %s2098_s17  ;;  %p331_p8 = scmp.eq.s32.totalorder %s1627_s30, 1 }
  0x11   : > { %s2423_s19 = scalar_select %p2104_p6, 1, 0 }
  0x12   : > { %p1807_p10 = scmp.lt.s32.totalorder %s1971_s28, 2  ;;  %p2111_p11 = por %p325_p7, %p43_p0 }
  0x13   : > { %p2115_p12 = por %p331_p8, %p49_p3  ;;  %s387_s22 = sand.u32 1, %s1967_s27  }
  0x14   : > { %s2424_s20 = scalar_select %p2111_p11, 1, 0 }
  0x15   : > { %s2425_s21 = scalar_select %p2115_p12, 1, 0 }
  0x16   : > { %s1631_s23 = sshll.u32 %s1971_s28, 7  ;;  %s1630_s24 = sshll.u32 %s387_s22, 3 }
  0x17   : > { %2426 = sst [smem:[#allocation12_spill]] %s2425_s21  ;;  %s2124_s17 = scalar_lea.hbm %s2395_s0, %s1631_s23 }
  0x18   : > { %s391_s30 = scalar_lea.vmem [#allocation2], %s1630_s24  ;;  %p2128_p13 = pnand %p1807_p10, %p2100_p5 }
  0x19   : > { %s398_s14 = sshll.u32 %s391_s30, 4  ;;  %s388_s27 = scalar_lea.sflag [#allocation3], %s387_s22  ;;  %s2132_s14 = int_to_ptr.vmem [resolvable:$true] %s398_s14 }
  0x1a   : > { %s1879_s21 = scalar_lea.hbm %s2124_s17, 128  ;;  %p1881_p3 = pneg %p2128_p13 }
  0x1b   : > { %p1880_p2 = scmp.ne.s32.totalorder %s2124_s17, %s1879_s21  ;;  %s1884_s18 = scalar_lea.hbm %s2395_s0, 256 }
  0x1c   : > { %p1885_p5 = scmp.lt.s32.totalorder %s2124_s17, %s2395_s0  ;;  %p1886_p8 = scmp.lt.s32.totalorder %s1884_s18, %s1879_s21 }
  0x1d   : > { %p1882_p4 = pnand %p1881_p3, %p1880_p2 }
  0x1e   : > { %p1887_p10 = por %p1886_p8, %p1885_p5 }
  0x1f   : > { %p1883_p7 = pneg %p1882_p4 }
  0x21   : > { %p1888_p9 = pnand %p1887_p10, %p1883_p7 }
  0x23   : > { %1891 = shalt.err (!%p1888_p9)
}
  0x24   : > { %s1892_s22 = scalar_lea.vmem %s2132_s14, 128  ;;  %s1973_s30 = smov [#allocation2]  }
  0x25   : > { %p1893_p0 = scmp.ne.s32.totalorder %s2132_s14, %s1892_s22  ;;  %s1897_s13 = sshll.u32 %s1973_s30, 4  ;;  %s1898_s13 = int_to_ptr.vmem [resolvable:$false] %s1897_s13 }
  0x26   : > { %s1899_s23 = scalar_lea.vmem %s1898_s13, 256  ;;  %p1900_p4 = scmp.lt.s32.totalorder %s2132_s14, %s1898_s13 }
  0x27   : > { %p1895_p1 = pnand %p1893_p0, %p1881_p3  ;;  %p1901_p12 = scmp.lt.s32.totalorder %s1899_s23, %s1892_s22 }
  0x29   : > { %p1896_p2 = pneg %p1895_p1  ;;  %p1902_p11 = por %p1901_p12, %p1900_p4 }
  0x2b   : > { %p1903_p6 = pnand %p1902_p11, %p1896_p2 }
  0x2d   : > { %1906 = shalt.err (!%p1903_p6)
}
  0x2e   : > { %1802 = dma.hbm_to_vmem [thread:$0]  (!%p2128_p13), %s2124_s17, 128, %s2132_s14, %s388_s27  }
  0x2f   : > { %p2428_p9 = scmp.lt.s32.totalorder %s1971_s28, 3  ;;  %p2429_p7 = scmp.ge.s32.totalorder %s1971_s28, 1 }
  0x31   : > { %p404_p0 = pnand %p2429_p7, %p2428_p9 }
  0x32   : > { %s2159_s21 = sand.u32 (!%p404_p0), 1, %s1963_s26   ;;  %p2430_p6 = scmp.ne.s32.totalorder (!%p404_p0), %s2423_s19, 0 }
  0x33   : > { %407 = sbr.rel (%p404_p0) target bundleno = 2440 (0x988), region = 72  ;;  %s1633_s13 = sshll.u32 (!%p404_p0), %s2159_s21, 3 }
  0x34   : > { %s410_s24 = scalar_lea.sflag (!%p404_p0), [#allocation3], %s2159_s21  ;;  %s413_s25 = scalar_lea.vmem (!%p404_p0), [#allocation2], %s1633_s13 }
  0x38   : > { %1950 = dma.done.wait (%p2430_p6), %s410_s24, 128  }
  0x39   : > { %1952 = vsyncadd (%p2430_p6), %s410_s24, 4294967168  ;;  %vm459_vm0 = vcmask 261120   ;;  %v2169_v0 = vld [vmem:[%s413_s25] sm:$0xff]  ;;  %v491_v7 = vld [vmem:[%s2398_s3 + $0x18] sm:$0xff]  ;;  %v1974_v8 = vmov 0.0   ;;  %vm1975_vm1 = vmmov 0  }
  0x3a   : > { %v460_v1 = vsel %vm459_vm0, %v2169_v0, 0.0  ;;  %1703 = vmatprep.subr.mxu1 %v1974_v8  ;;  %v490_v9 = vld [vmem:[%s2398_s3 + $0x10] sm:$0xff]  ;;  %1711 = vmatprep.mubr.msk.f32.mxu1 %vm1975_vm1, %v1974_v8  ;;  %v489_v10 = vld [vmem:[%s2398_s3 + $0x8] sm:$0xff]  ;;  %v488_v11 = vld [vmem:[%s2398_s3] sm:$0xff]  ;;  %s1976_s17 = smov 120   ;;  %s1977_s19 = smov 96  }
  0x3b   : > { %461 = vadd.xlane.f32.xlu0 %v460_v1  ;;  %1704 = vmatpush3.msra.mxu1 %v491_v7  ;;  %v1635_v16 = vld [vmem:[%s2396_s1] ss:$0 sm:$0xff]  ;;  %s1978_s18 = smov 88   ;;  %s1979_s15 = smov 80   ;;  %vm575_vm2 = vcmask 64512   ;;  %vm1245_vm3 = vcmask 130048  }
  0x3c   : > { %1724 = vmatprep.subr.mxu0 %v1974_v8  ;;  %1705 = vmatprep.subr.mxu1 %v1974_v8  ;;  %v1636_v18 = vld [vmem:[%s2397_s2] ss:$0 sm:$0xff]  ;;  %s1980_s16 = smov 112   ;;  %s1981_s22 = smov 72   ;;  %vm1247_vm4 = vcmask 195584   ;;  %vm1467_vm5 = vcmask 523264  }
  0x3d   : > { %1726 = vmatprep.mubr.msk.f32.mxu0 %vm1975_vm1, %v1974_v8  ;;  %1706 = vmatpush3.msra.mxu1 %v490_v9  ;;  %v1637_v21 = vld [vmem:[%s2399_s4] ss:$0 sm:$0xff]  ;;  %s1982_s30 = smov 104   ;;  %s1983_s23 = smov 64  }
  0x3e   : > { %1707 = vmatprep.subr.mxu1 %v1974_v8  ;;  %s1984_s24 = smov 48   ;;  %s1985_s25 = smov 40  }
  0x3f   : > { %1708 = vmatpush3.msra.mxu1 %v489_v10  ;;  %s1986_s27 = smov 56   ;;  %p2432_p12 = scmp.ne.s32.totalorder %s2424_s20, 0 }
  0x40   : > { %1709 = vmatprep.subr.mxu1 %v1974_v8 }
  0x41   : > { %1710 = vmatpush3.msra.mxu1 %v488_v11 }
  0x42   : > { %1714 = vmatprep.subr.mxu1 %v1974_v8 }
  0xc4   : > { %v462_v2 = vpop.xlane.xlu0 %461 }
  0xc5   : > { %v464_v3 = vmul.f32 0.03125, %v462_v2 }
  0xc7   : > { %v465_v4 = vsub.f32 %v2169_v0, %v464_v3 }
  0xc9   : > { %v466_v5 = vmul.f32 %v465_v4, %v465_v4 }
  0xcb   : > { %v467_v6 = vsel %vm459_vm0, %v466_v5, 0.0 }
  0xcc   : > { %468 = vadd.xlane.f32.xlu0 %v467_v6 }
 0x155   : > { %v469_v12 = vpop.xlane.xlu0 %468 }
 0x156   : > { %v470_v13 = vmul.f32 0.03125, %v469_v12 }
 0x158   : > { %v471_v14 = vadd.f32 1e-05, %v470_v13 }
 0x15a   : > { %1857 = vrsqrt.f32 %v471_v14 }
 0x167   : > { %v1858_v15 = vpop.eup %1857 }
 0x168   : > { %v473_v17 = vmul.f32 %v1858_v15, %v465_v4 }
 0x16a   : > { %v480_v19 = vmul.f32 %v1635_v16, %v473_v17 }
 0x16c   : > { %v487_v20 = vadd.f32 %v1636_v18, %v480_v19  ;;  %v1252_v18 = vld [vmem:[%s2400_s5 + $0x18] sm:$0xff]  ;;  %v1251_v19 = vld [vmem:[%s2400_s5 + $0x10] sm:$0xff] }
 0x16e   : > { %1712 = vmatmul.mubr.msk.f32.vlgmr.msra.gmra.mxu1 %vm459_vm0, %v487_v20 }
 0x16f   : > { %1716 = vmatprep.mubr.msk.f32.mxu1 %vm1975_vm1, %v1974_v8 }
 0x22e   : > { %v568_v22 = vpop.f32.mrf.mxu1 }
 0x22f   : > { %v2209_v23 = vadd.f32 %v1637_v21, %v568_v22  ;;  %v1250_v21 = vld [vmem:[%s2400_s5 + $0x8] sm:$0xff] }
 0x230   : > { %v1713_v24 = vpop.f32.mrf.mxu1 }
 0x231   : > { %737 = vrot.lane.b32.xlu0 %v2209_v23, %s1976_s17  ;;  %573 = vrot.lane.b32.xlu1 %v2209_v23, %s1977_s19  ;;  %s2431_s19 = sld [smem:[#allocation13_spill]] }
 0x235   : > { %739 = vrot.lane.b32.xlu1 %v2209_v23, %s1978_s18 }
 0x239   : > { %904 = vrot.lane.b32.xlu1 %v2209_v23, %s1979_s15  ;;  %s1544_s15 = scalar_lea.sflag [#allocation4], %s2159_s21 }
 0x23d   : > { %902 = vrot.lane.b32.xlu1 %v2209_v23, %s1980_s16 }
 0x241   : > { %1069 = vrot.lane.b32.xlu1 %v2209_v23, %s1981_s22 }
 0x245   : > { %1067 = vrot.lane.b32.xlu1 %v2209_v23, %s1982_s30 }
 0x2a3   : > { %v574_v25 = vpop.permute.xlu1 %573  ;;  %v738_v27 = vpop.permute.xlu0 %737 }
 0x2a4   : > { %1715 = vmatpush3.xpose.msk.msra.mxu1 %vm575_vm2, %v574_v25 }
 0x2a5   : > { %1719 = vmatprep.subr.mxu1 %v1974_v8 }
 0x2a7   : > { %1717 = vmatmul.mubr.msk.f32.vlgmr.msra.gmra.mxu1 %vm575_vm2, %v2209_v23  ;;  %v740_v26 = vpop.permute.xlu1 %739 }
 0x2a8   : > { %1725 = vmatpush3.xpose.msk.msra.mxu0 %vm575_vm2, %v740_v26  ;;  %1721 = vmatprep.mubr.msk.f32.mxu1 %vm1975_vm1, %v1974_v8 }
 0x2a9   : > { %1734 = vmatprep.subr.mxu0 %v1974_v8 }
 0x2ab   : > { %1727 = vmatmul.mubr.msk.f32.vlgmr.msra.gmra.mxu0 %vm575_vm2, %v738_v27  ;;  %v905_v28 = vpop.permute.xlu1 %904 }
 0x2ac   : > { %1735 = vmatpush3.xpose.msk.msra.mxu0 %vm575_vm2, %v905_v28  ;;  %1736 = vmatprep.mubr.msk.f32.mxu0 %vm1975_vm1, %v1974_v8 }
 0x2ad   : > { %1744 = vmatprep.subr.mxu0 %v1974_v8 }
 0x2af   : > { %v903_v29 = vpop.permute.xlu1 %902 }
 0x2b0   : > { %1737 = vmatmul.mubr.msk.f32.vlgmr.msra.gmra.mxu0 %vm575_vm2, %v903_v29 }
 0x2b1   : > { %1746 = vmatprep.mubr.msk.f32.mxu0 %vm1975_vm1, %v1974_v8 }
 0x2b3   : > { %v1070_v30 = vpop.permute.xlu1 %1069 }
 0x2b4   : > { %1745 = vmatpush3.xpose.msk.msra.mxu0 %vm575_vm2, %v1070_v30 }
 0x2b5   : > { %1754 = vmatprep.subr.mxu0 %v1974_v8 }
 0x2b7   : > { %v1068_v31 = vpop.permute.xlu1 %1067 }
 0x2b8   : > { %1747 = vmatmul.mubr.msk.f32.vlgmr.msra.gmra.mxu0 %vm575_vm2, %v1068_v31 }
 0x2b9   : > { %1762 = vmatprep.mubr.msk.f32.mxu0 %vm1975_vm1, %v1974_v8  ;;  %1755 = vmatpush3.msra.mxu0 %v1252_v18 }
 0x2ba   : > { %1756 = vmatprep.subr.mxu0 %v1974_v8 }
 0x2bb   : > { %1757 = vmatpush3.msra.mxu0 %v1251_v19 }
 0x2bc   : > { %1758 = vmatprep.subr.mxu0 %v1974_v8 }
 0x2bd   : > { %1759 = vmatpush3.msra.mxu0 %v1250_v21 }
 0x2be   : > { %1760 = vmatprep.subr.mxu0 %v1974_v8 }
 0x367   : > { %v646_v32 = vpop.f32.mrf.mxu1 }
 0x368   : > { %v650_v33 = vsel %vm575_vm2, %v646_v32, -inf }
 0x369   : > { %651 = vmax.xlane.f32.xlu1 %v650_v33  ;;  %v1718_v34 = vpop.f32.mrf.mxu1 }
 0x36b   : > { %v811_v35 = vpop.f32.mrf.mxu0 }
 0x36c   : > { %v815_v36 = vsel %vm575_vm2, %v811_v35, -inf }
 0x36d   : > { %816 = vmax.xlane.f32.xlu0 %v815_v36  ;;  %v1728_v37 = vpop.f32.mrf.mxu0  ;;  %v1651_v36 = vld [vmem:[%s2401_s6] ss:$0 sm:$0xff] }
 0x370   : > { %v976_v38 = vpop.f32.mrf.mxu0 }
 0x371   : > { %v980_v39 = vsel %vm575_vm2, %v976_v38, -inf }
 0x372   : > { %v1738_v40 = vpop.f32.mrf.mxu0  ;;  %981 = vmax.xlane.f32.xlu1 %v980_v39 }
 0x378   : > { %v1141_v41 = vpop.f32.mrf.mxu0 }
 0x379   : > { %v1145_v42 = vsel %vm575_vm2, %v1141_v41, -inf }
 0x37a   : > { %1146 = vmax.xlane.f32.xlu0 %v1145_v42  ;;  %v1748_v43 = vpop.f32.mrf.mxu0 }
 0x383   : > { %661 = vrot.lane.b32.xlu1 %v2209_v23, %s1983_s23  ;;  %s1987_s23 = smov 8  }
 0x3f2   : > { %v652_v44 = vpop.xlane.xlu1 %651 }
 0x3f3   : > { %v653_v45 = vsub.f32 %v646_v32, %v652_v44 }
 0x3f5   : > { %v654_v46 = vmul.f32 1.442695, %v653_v45 }
 0x3f6   : > { %v817_v47 = vpop.xlane.xlu0 %816 }
 0x3f7   : > { %1859 = vpow2.f32 %v654_v46  ;;  %v818_v48 = vsub.f32 %v811_v35, %v817_v47  ;;  %v1366_v47 = vld [vmem:[%s2404_s9 + $0x18] sm:$0xff] }
 0x3f9   : > { %v819_v49 = vmul.f32 1.442695, %v818_v48  ;;  %v1364_v48 = vld [vmem:[%s2404_s9 + $0x8] sm:$0xff] }
 0x3fb   : > { %1861 = vpow2.f32 %v819_v49  ;;  %v982_v50 = vpop.xlane.xlu1 %981  ;;  %v1363_v49 = vld [vmem:[%s2404_s9] sm:$0xff] }
 0x3fc   : > { %v983_v51 = vsub.f32 %v976_v38, %v982_v50 }
 0x3fe   : > { %v984_v52 = vmul.f32 1.442695, %v983_v51 }
 0x3ff   : > { %v662_v53 = vpop.permute.xlu1 %661 }
 0x400   : > { %1863 = vpow2.f32 %v984_v52  ;;  %1720 = vmatpush3.msra.mxu1 %v662_v53 }
 0x401   : > { %1729 = vmatprep.subr.mxu1 %v1974_v8 }
 0x403   : > { %v1147_v54 = vpop.xlane.xlu0 %1146 }
 0x404   : > { %v1860_v55 = vpop.eup %1859  ;;  %v1148_v56 = vsub.f32 %v1141_v41, %v1147_v54  ;;  %v1653_v54 = vld [vmem:[%s2402_s7] ss:$0 sm:$0xff] }
 0x405   : > { %v656_v57 = vsel %vm575_vm2, %v1860_v55, 0.0 }
 0x406   : > { %v1149_v58 = vmul.f32 1.442695, %v1148_v56  ;;  %657 = vadd.xlane.f32.xlu1 %v656_v57  ;;  %v1654_v56 = vld [vmem:[%s2403_s8] ss:$0 sm:$0xff] }
 0x408   : > { %v1862_v59 = vpop.eup %1861  ;;  %1865 = vpow2.f32 %v1149_v58 }
 0x409   : > { %v821_v60 = vsel %vm575_vm2, %v1862_v59, 0.0 }
 0x40a   : > { %822 = vadd.xlane.f32.xlu0 %v821_v60  ;;  %v1458_v60 = vld [vmem:[%s2406_s11 + $0x30] sm:$0xff] }
 0x40d   : > { %v1864_v61 = vpop.eup %1863 }
 0x40e   : > { %v986_v62 = vsel %vm575_vm2, %v1864_v61, 0.0 }
 0x40f   : > { %987 = vadd.xlane.f32.xlu1 %v986_v62  ;;  %v1456_v62 = vld [vmem:[%s2406_s11 + $0x20] sm:$0xff] }
 0x415   : > { %v1866_v63 = vpop.eup %1865 }
 0x416   : > { %v1151_v1 = vsel %vm575_vm2, %v1866_v63, 0.0 }
 0x417   : > { %1152 = vadd.xlane.f32.xlu0 %v1151_v1  ;;  %v1454_v1 = vld [vmem:[%s2406_s11 + $0x10] sm:$0xff] }
 0x420   : > { %991 = vrot.lane.b32.xlu1 %v2209_v23, %s1984_s24  ;;  %s1988_s24 = smov 16  }
 0x424   : > { %1156 = vrot.lane.b32.xlu1 %v2209_v23, %s1985_s25  ;;  %s1989_s25 = smov 24  }
 0x42d   : > { %826 = vrot.lane.b32.xlu0 %v2209_v23, %s1986_s27  ;;  %v1249_v23 = vld [vmem:[%s2400_s5] sm:$0xff] }
 0x42e   : > { %1761 = vmatpush3.msra.mxu0 %v1249_v23 }
 0x42f   : > { %1776 = vmatprep.subr.mxu0 %v1974_v8 }
 0x48f   : > { %v658_v2 = vpop.xlane.xlu1 %657 }
 0x490   : > { %1867 = vrcp.f32 %v658_v2  ;;  %v1453_v2 = vld [vmem:[%s2406_s11 + $0x8] sm:$0xff] }
 0x493   : > { %v823_v3 = vpop.xlane.xlu0 %822 }
 0x494   : > { %1869 = vrcp.f32 %v823_v3  ;;  %v1452_v3 = vld [vmem:[%s2406_s11] sm:$0xff] }
 0x498   : > { %v988_v4 = vpop.xlane.xlu1 %987 }
 0x499   : > { %1871 = vrcp.f32 %v988_v4  ;;  %v1655_v4 = vld [vmem:[%s2405_s10] ss:$0 sm:$0xff] }
 0x49c   : > { %v992_v10 = vpop.permute.xlu1 %991 }
 0x49d   : > { %v1868_v5 = vpop.eup %1867 }
 0x49e   : > { %v660_v6 = vmul.f32 %v1868_v5, %v1860_v55 }
 0x4a0   : > { %v1153_v7 = vpop.xlane.xlu0 %1152  ;;  %1722 = vmatmul.mubr.msk.f32.vlgmr.msra.gmra.mxu1 %vm575_vm2, %v660_v6  ;;  %v1157_v15 = vpop.permute.xlu1 %1156 }
 0x4a1   : > { %v1870_v9 = vpop.eup %1869  ;;  %1873 = vrcp.f32 %v1153_v7  ;;  %1731 = vmatprep.mubr.msk.f32.mxu1 %vm1975_vm1, %v1974_v8 }
 0x4a2   : > { %v825_v12 = vmul.f32 %v1870_v9, %v1862_v59  ;;  %v1459_v59 = vld [vmem:[%s2406_s11 + $0x38] sm:$0xff] }
 0x4a4   : > { %v827_v11 = vpop.permute.xlu0 %826 }
 0x4a5   : > { %1730 = vmatpush3.msra.mxu1 %v827_v11 }
 0x4a6   : > { %v1872_v13 = vpop.eup %1871  ;;  %1732 = vmatmul.mubr.msk.f32.vlgmr.msra.gmra.mxu1 %vm575_vm2, %v825_v12  ;;  %1739 = vmatprep.subr.mxu1 %v1974_v8 }
 0x4a7   : > { %1740 = vmatpush3.msra.mxu1 %v992_v10  ;;  %1741 = vmatprep.mubr.msk.f32.mxu1 %vm1975_vm1, %v1974_v8  ;;  %v990_v14 = vmul.f32 %v1872_v13, %v1864_v61  ;;  %v1457_v61 = vld [vmem:[%s2406_s11 + $0x28] sm:$0xff] }
 0x4a8   : > { %1749 = vmatprep.subr.mxu1 %v1974_v8 }
 0x4aa   : > { %1742 = vmatmul.mubr.msk.f32.vlgmr.msra.gmra.mxu1 %vm575_vm2, %v990_v14 }
 0x4ab   : > { %1750 = vmatpush3.msra.mxu1 %v1157_v15  ;;  %1751 = vmatprep.mubr.msk.f32.mxu1 %vm1975_vm1, %v1974_v8 }
 0x4ac   : > { %1765 = vmatprep.subr.mxu1 %v1974_v8 }
 0x4ae   : > { %v1874_v16 = vpop.eup %1873 }
 0x4af   : > { %v1155_v17 = vmul.f32 %v1874_v16, %v1866_v63  ;;  %v1455_v63 = vld [vmem:[%s2406_s11 + $0x18] sm:$0xff] }
 0x4b1   : > { %1752 = vmatmul.mubr.msk.f32.vlgmr.msra.gmra.mxu1 %vm575_vm2, %v1155_v17 }
 0x4b2   : > { %1773 = vmatprep.mubr.msk.f32.mxu1 %vm1975_vm1, %v1974_v8  ;;  %1766 = vmatpush3.msra.mxu1 %v1366_v47 }
 0x4b3   : > { %1767 = vmatprep.subr.mxu1 %v1974_v8 }
 0x560   : > { %v733_v20 = vpop.f32.mrf.mxu1 }
 0x562   : > { %v1723_v22 = vpop.f32.mrf.mxu1 }
 0x566   : > { %v898_v24 = vpop.f32.mrf.mxu1 }
 0x567   : > { %1233 = vrot.lane.b32.xlu0 %v898_v24, %s1987_s23 }
 0x568   : > { %v1733_v25 = vpop.f32.mrf.mxu1 }
 0x56a   : > { %v1063_v26 = vpop.f32.mrf.mxu1 }
 0x56b   : > { %1237 = vrot.lane.b32.xlu1 %v1063_v26, %s1988_s24  ;;  %s1660_s24 = sshll.u32 %s2082_s29, 7  ;;  %s1990_s29 = smov [#allocation5]  }
 0x56c   : > { %v1743_v27 = vpop.f32.mrf.mxu1  ;;  %s1555_s18 = scalar_lea.hbm %s2431_s19, %s1660_s24 }
 0x571   : > { %v1228_v28 = vpop.f32.mrf.mxu1 }
 0x572   : > { %1241 = vrot.lane.b32.xlu0 %v1228_v28, %s1989_s25  ;;  %s455_s25 = scalar_lea.vmem [#allocation5], %s1633_s13  ;;  %s1911_s13 = sshll.u32 %s1990_s29, 4  ;;  %s1912_s13 = int_to_ptr.vmem [resolvable:$false] %s1911_s13 }
 0x573   : > { %v1753_v29 = vpop.f32.mrf.mxu1  ;;  %s1557_s27 = sshll.u32 %s455_s25, 4  ;;  %s1913_s22 = scalar_lea.vmem %s1912_s13, 256  ;;  %s1558_s27 = int_to_ptr.vmem [resolvable:$true] %s1557_s27 }
 0x574   : > { %s1907_s16 = scalar_lea.vmem %s1558_s27, 128  ;;  %p1914_p3 = scmp.lt.s32.totalorder %s1558_s27, %s1912_s13 }
 0x575   : > { %p1908_p11 = scmp.ne.s32.totalorder %s1558_s27, %s1907_s16  ;;  %p1915_p5 = scmp.lt.s32.totalorder %s1913_s22, %s1907_s16 }
 0x577   : > { %p1909_p13 = pnand %p1908_p11, %p2432_p12  ;;  %p1916_p8 = por %p1915_p5, %p1914_p3 }
 0x579   : > { %p1910_p1 = pneg %p1909_p13 }
 0x57b   : > { %p1917_p10 = pnand %p1916_p8, %p1910_p1 }
 0x5d9   : > { %v1234_v30 = vpop.permute.xlu0 %1233 }
 0x5da   : > { %v1244_v32 = vsel %vm575_vm2, %v733_v20, %v1234_v30 }
 0x5dd   : > { %v1238_v31 = vpop.permute.xlu1 %1237 }
 0x5de   : > { %v1246_v33 = vsel %vm1245_vm3, %v1244_v32, %v1238_v31 }
 0x5e4   : > { %v1242_v34 = vpop.permute.xlu0 %1241 }
 0x5e5   : > { %v1248_v35 = vsel %vm1247_vm4, %v1246_v33, %v1242_v34 }
 0x5e6   : > { %1763 = vmatmul.mubr.msk.f32.vlgmr.msra.gmra.mxu0 %vm459_vm0, %v1248_v35 }
 0x5e7   : > { %1792 = vmatprep.mubr.msk.f32.mxu0 %vm1975_vm1, %v1974_v8  ;;  %1777 = vmatpush3.msra.mxu0 %v1459_v59 }
 0x5e8   : > { %1778 = vmatprep.subr.mxu0 %v1974_v8 }
 0x5e9   : > { %1779 = vmatpush3.msra.mxu0 %v1458_v60 }
 0x5ea   : > { %1780 = vmatprep.subr.mxu0 %v1974_v8 }
 0x5eb   : > { %1781 = vmatpush3.msra.mxu0 %v1457_v61 }
 0x5ec   : > { %1782 = vmatprep.subr.mxu0 %v1974_v8 }
 0x5ed   : > { %1783 = vmatpush3.msra.mxu0 %v1456_v62 }
 0x5ee   : > { %1784 = vmatprep.subr.mxu0 %v1974_v8 }
 0x5ef   : > { %1785 = vmatpush3.msra.mxu0 %v1455_v63 }
 0x5f0   : > { %1786 = vmatprep.subr.mxu0 %v1974_v8 }
 0x5f1   : > { %1787 = vmatpush3.msra.mxu0 %v1454_v1 }
 0x5f2   : > { %1788 = vmatprep.subr.mxu0 %v1974_v8 }
 0x5f3   : > { %1789 = vmatpush3.msra.mxu0 %v1453_v2 }
 0x5f4   : > { %1790 = vmatprep.subr.mxu0 %v1974_v8 }
 0x5f5   : > { %1791 = vmatpush3.msra.mxu0 %v1452_v3 }
 0x6a6   : > { %v1329_v37 = vpop.f32.mrf.mxu0 }
 0x6a7   : > { %v1330_v38 = vadd.f32 %v1651_v36, %v1329_v37 }
 0x6a8   : > { %v1764_v39 = vpop.f32.mrf.mxu0 }
 0x6a9   : > { %v2291_v40 = vadd.f32 %v1330_v38, %v2169_v0  ;;  %v1365_v0 = vld [vmem:[%s2404_s9 + $0x10] sm:$0xff] }
 0x6aa   : > { %1768 = vmatpush3.msra.mxu1 %v1365_v0 }
 0x6ab   : > { %v1336_v41 = vsel %vm459_vm0, %v2291_v40, 0.0  ;;  %1769 = vmatprep.subr.mxu1 %v1974_v8 }
 0x6ac   : > { %1337 = vadd.xlane.f32.xlu1 %v1336_v41  ;;  %1770 = vmatpush3.msra.mxu1 %v1364_v48 }
 0x6ad   : > { %1771 = vmatprep.subr.mxu1 %v1974_v8  ;;  %v1657_v8 = vld [vmem:[%s2407_s12] ss:$0 sm:$0xff] }
 0x6ae   : > { %1772 = vmatpush3.msra.mxu1 %v1363_v49 }
 0x735   : > { %v1338_v42 = vpop.xlane.xlu1 %1337 }
 0x736   : > { %v1339_v43 = vmul.f32 0.03125, %v1338_v42 }
 0x738   : > { %v1340_v44 = vsub.f32 %v2291_v40, %v1339_v43 }
 0x73a   : > { %v1341_v45 = vmul.f32 %v1340_v44, %v1340_v44 }
 0x73c   : > { %v1342_v46 = vsel %vm459_vm0, %v1341_v45, 0.0 }
 0x73d   : > { %1343 = vadd.xlane.f32.xlu0 %v1342_v46 }
 0x7c6   : > { %v1344_v50 = vpop.xlane.xlu0 %1343 }
 0x7c7   : > { %v1345_v51 = vmul.f32 0.03125, %v1344_v50 }
 0x7c9   : > { %v1346_v52 = vadd.f32 1e-05, %v1345_v51 }
 0x7cb   : > { %1875 = vrsqrt.f32 %v1346_v52 }
 0x7d8   : > { %v1876_v53 = vpop.eup %1875 }
 0x7d9   : > { %v1348_v55 = vmul.f32 %v1876_v53, %v1340_v44 }
 0x7db   : > { %v1355_v57 = vmul.f32 %v1653_v54, %v1348_v55 }
 0x7dd   : > { %v1362_v58 = vadd.f32 %v1654_v56, %v1355_v57 }
 0x7df   : > { %1774 = vmatmul.mubr.msk.f32.vlgmr.msra.gmra.mxu1 %vm459_vm0, %v1362_v58 }
 0x89f   : > { %v1443_v5 = vpop.f32.mrf.mxu1 }
 0x8a0   : > { %v1444_v6 = vadd.f32 %v1655_v4, %v1443_v5 }
 0x8a1   : > { %v1775_v7 = vpop.f32.mrf.mxu1 }
 0x8a2   : > { %v1448_v9 = vmul.f32 0.70710677, %v1444_v6  ;;  %v1447_v11 = vmul.f32 0.5, %v1444_v6 }
 0x8a4   : > { %1877 = verf.f32 %v1448_v9 }
 0x8b1   : > { %v1878_v10 = vpop.eup %1877 }
 0x8b2   : > { %v1450_v12 = vadd.f32 1.0, %v1878_v10 }
 0x8b4   : > { %v1451_v13 = vmul.f32 %v1450_v12, %v1447_v11 }
 0x8b6   : > { %1793 = vmatmul.mubr.msk.f32.vlgmr.msra.gmra.mxu0 %vm1467_vm5, %v1451_v13 }
 0x976   : > { %v1537_v14 = vpop.f32.mrf.mxu0 }
 0x977   : > { %v1538_v15 = vadd.f32 %v1657_v8, %v1537_v14 }
 0x978   : > { %v1794_v16 = vpop.f32.mrf.mxu0 }
 0x979   : > { %v1541_v17 = vadd.f32 %v1538_v15, %v2291_v40 }
 0x97b   : > { %1542 = vst.msk [vmem:[%s455_s25] sm:$0xff] %vm459_vm0, %v1541_v17 }
 0x97c   : > { %1920 = shalt.err (!%p1917_p10)
}
 0x97d   : > { %s1921_s30 = scalar_lea.hbm %s1555_s18, 128  ;;  %s1925_s24 = scalar_lea.hbm %s2431_s19, 256 }
 0x97e   : > { %p1922_p2 = scmp.ne.s32.totalorder %s1555_s18, %s1921_s30  ;;  %p1926_p7 = scmp.lt.s32.totalorder %s1555_s18, %s2431_s19 }
 0x97f   : > { %p1927_p0 = scmp.lt.s32.totalorder %s1925_s24, %s1921_s30 }
 0x980   : > { %p1923_p4 = pnand %p1922_p2, %p2432_p12 }
 0x981   : > { %p1928_p6 = por %p1927_p0, %p1926_p7 }
 0x982   : > { %p1924_p9 = pneg %p1923_p4 }
 0x984   : > { %p1929_p11 = pnand %p1928_p6, %p1924_p9 }
 0x986   : > { %1932 = shalt.err (!%p1929_p11)
}
 0x987   : > { %1797 = dma.vmem_to_hbm [thread:$0]  (%p2432_p12), %s1558_s27, 128, %s1555_s18, %s1544_s15  }
 0x988 PF: > { %s2433_s17 = sld [smem:[#allocation8_spill]]  ;;  %p2436_p1 = scmp.ge.s32.totalorder %s1971_s28, 2 }
 0x989   : > { %s2434_s16 = sld [smem:[#allocation12_spill]] }
 0x98e   : > { %s1569_s29 = sand.u32 1, %s2433_s17  }
 0x98f   : > { %p2435_p13 = scmp.ne.s32.totalorder %s2434_s16, 0  ;;  %s1570_s13 = scalar_lea.sflag [#allocation4], %s1569_s29 }
 0x991   : > { %p1804_p3 = pnand %p2436_p1, %p2435_p13 }
 0x993   : > { %p1805_p5 = pneg %p1804_p3 }
 0x995   : > { %1954 = dma.done.wait (%p1805_p5), %s1570_s13, 128  }
 0x996   : > { %1956 = vsyncadd (%p1805_p5), %s1570_s13, 4294967168  ;;  %s2437_s28 = sld [smem:[#allocation10_spill]]  ;;  %s2440_s25 = smov %s1963_s26 }
 0x997   : > { %s2438_s22 = sld [smem:[#allocation9_spill]] }
 0x998   : > { %s2439_s27 = sld [smem:[#allocation11_spill]] }
 0x99c   : > { %p26_p8 = scmp.ge.s32.totalorder %s2437_s28, 4  }
 0x99d   : > { %s2441_s26 = smov %s2438_s22 }
 0x99e   :  { %28 = sbr.rel (!%p26_p8) target bundleno = 7 (0x7), region = 117 }
 0x9a3   :  { %1575 = vsyncpa [#allocation3], 1 }
 0x9a4   :  { %1577 = vsyncpa [#allocation3 + $0x1], 1 }
 0x9a5   :  { %1578 = vsyncpa [#allocation4], 1 }
 0x9a6   :  { %1580 = vsyncpa [#allocation4 + $0x1], 1 }

</bundles_post_ra>
